<compile_context>
chip_gen: v5e
topology: v5e:2x2
jax: 0.10.0
libtpu: 0.0.40
codegen_flags: <defaults>
</compile_context>

<pallas_src>
import functools
import math

import jax
import jax.numpy as jnp
from jax import lax
from jax.experimental import pallas as pl
from jax.experimental.pallas import tpu as pltpu


# ----------------------------------------------------------------------------
# Constants / tiling policy
# ----------------------------------------------------------------------------
_SELU_ALPHA = 1.6732632423543772848170429916717
_SELU_SCALE = 1.0507009873554804934193349852946

# Sum of all block buffers (inputs + outputs, single-buffered) per grid step.
_BLOCK_BUDGET_BYTES = 8 * 1024 * 1024
# Minimum per-axis payload before we force a >=2-step parallel grid (v7x 2 TC).
_SPLIT_MIN_BYTES = 2 * 1024 * 1024
_LANE_CANDIDATES = (4096, 2048, 1024, 512, 256, 128)


def _sublane_multiple(*dtypes):
    """Minimum row-tile granularity (sub-32-bit dtypes pack along sublanes)."""
    sub = 8
    for dt in dtypes:
        isz = jnp.dtype(dt).itemsize
        if isz == 2:
            sub = max(sub, 16)
        elif isz == 1:
            sub = max(sub, 32)
    return sub


def _pick_tile(extent, unit, bytes_per_index, target_bytes):
    """Tile along one blocked axis so tile*bytes_per_index ~= target_bytes."""
    if extent <= unit:
        return extent
    t = (target_bytes // max(1, bytes_per_index)) // unit * unit
    t = max(unit, min(t, extent))
    if t == extent:
        return extent
    # Prefer a nearby exact divisor (no masked tail); otherwise rely on
    # pl.cdiv + Pallas boundary masking, which is cheap.
    cand = t
    lo = max(unit, t // 2)
    while cand >= lo:
        if extent % cand == 0:
            return cand
        cand -= unit
    return t


def _ensure_min_grid(extent, tile, unit, bytes_per_index):
    """Split a single-block 'parallel' axis into >=2 blocks when it carries
    enough bytes.  v7x has 2 TensorCores per chip and the parallel grid axis
    is how work is sharded across them; a 1-step grid leaves one idle.  Only
    splitting above _SPLIT_MIN_BYTES keeps the extra ~0.35us grid step
    negligible on single-TC v5e/v6e."""
    if tile < extent or extent <= unit:
        return tile
    if extent * bytes_per_index < _SPLIT_MIN_BYTES:
        return tile
    half = pl.cdiv(extent, 2)
    half = pl.cdiv(half, unit) * unit
    return min(extent, max(unit, half))


def _vmem_limit_bytes(block_bytes):
    """Scoped-VMEM limit derived from the real footprint: 2x (double buffer)
    plus slack for in-kernel temporaries, clamped under v7x's 64 MiB."""
    need = 3 * int(block_bytes) + (4 << 20)
    return max(32 << 20, min(need, 48 << 20))


# ----------------------------------------------------------------------------
# Elementwise activation functions (match PyTorch defaults).
# ----------------------------------------------------------------------------
def _elementwise_fn(act_type, **kw):
    if act_type == "relu":
        return lambda x: jnp.maximum(x, 0.0)
    if act_type == "relu6":
        return lambda x: jnp.clip(x, 0.0, 6.0)
    if act_type == "leakyrelu":
        slope = kw.get("negative_slope", 0.01)
        return lambda x: jnp.where(x >= 0, x, slope * x)
    if act_type == "celu":
        alpha = kw.get("alpha", 1.0)
        return lambda x: jnp.maximum(x, 0.0) + jnp.minimum(
            0.0, alpha * (jnp.exp(x / alpha) - 1.0))
    if act_type == "elu":
        alpha = kw.get("alpha", 1.0)
        return lambda x: jnp.where(x > 0, x, alpha * (jnp.exp(x) - 1.0))
    if act_type == "hardswish":
        return lambda x: x * jnp.clip(x + 3.0, 0.0, 6.0) / 6.0
    if act_type == "hardtanh":
        lo = kw.get("min_val", -1.0)
        hi = kw.get("max_val", 1.0)
        return lambda x: jnp.clip(x, lo, hi)
    if act_type == "gelu":
        approximate = kw.get("approximate", "none")
        if approximate == "tanh":
            # One EUP tanh; preferred on v7x where exact erf can be VALU-bound.
            return lambda x: 0.5 * x * (1.0 + jnp.tanh(
                math.sqrt(2.0 / math.pi) * (x + 0.044715 * x * x * x)))
        # PyTorch default: exact erf-based GELU.
        return lambda x: 0.5 * x * (1.0 + lax.erf(x / math.sqrt(2.0)))
    if act_type == "selu":
        return lambda x: _SELU_SCALE * jnp.where(
            x > 0, x, _SELU_ALPHA * (jnp.exp(x) - 1.0))
    if act_type == "silu":
        return lambda x: x * jax.nn.sigmoid(x)
    if act_type == "sigmoid":
        return jax.nn.sigmoid
    if act_type == "tanh":
        return jnp.tanh
    if act_type == "none":
        return lambda x: x
    raise NotImplementedError(f"Unsupport activation type: {act_type}")


# ----------------------------------------------------------------------------
# Pallas kernels
# ----------------------------------------------------------------------------
def _elementwise_kernel(fn, x_ref, o_ref):
    o_ref[...] = fn(x_ref[...]).astype(o_ref.dtype)


def _prelu_kernel(w_ref, x_ref, o_ref):
    # PReLU with num_parameters=1 (PyTorch default): single learned scalar.
    w = w_ref[0]
    x = x_ref[...]
    o_ref[...] = jnp.where(x >= 0, x, w * x).astype(o_ref.dtype)


def _glu_kernel(a_ref, b_ref, o_ref):
    # a/b are same-shape halves -> pure elementwise op.
    o_ref[...] = (a_ref[...] * jax.nn.sigmoid(b_ref[...])).astype(o_ref.dtype)


def _softmax_lastdim_kernel(x_ref, o_ref):
    x = x_ref[...].astype(jnp.float32)
    m = jnp.max(x, axis=-1, keepdims=True)
    e = jnp.exp(x - m)
    s = jnp.sum(e, axis=-1, keepdims=True)
    # Exact reciprocal (approx=True would exceed a 1e-5 tolerance check) but
    # still turns the per-element divide into a multiply.
    o_ref[...] = (e * pl.reciprocal(s, approx=False)).astype(o_ref.dtype)


def _softmax_sublane_kernel(x_ref, o_ref):
    # Block (t_outer, C, t_inner): the softmax axis C lives on the sublane
    # axis (always a full extent -> never masked), lanes stay dense.
    x = x_ref[...].astype(jnp.float32)
    m = jnp.max(x, axis=-2, keepdims=True)
    e = jnp.exp(x - m)
    s = jnp.sum(e, axis=-2, keepdims=True)
    o_ref[...] = (e * pl.reciprocal(s, approx=False)).astype(o_ref.dtype)


# ----------------------------------------------------------------------------
# Host-side glue
# ----------------------------------------------------------------------------
def _run_flat_elementwise(kernel, inputs, out_dtype, smem_arg=None):
    """Run a purely-elementwise `kernel` over same-shape `inputs`, flattened
    to a lane-dense 2-D view (no padding, no extra HBM traffic)."""
    shape = inputs[0].shape
    total = int(math.prod(shape)) if shape else 1
    dtypes = [a.dtype for a in inputs] + [out_dtype]
    sub = _sublane_multiple(*dtypes)
    itemsize = max(jnp.dtype(dt).itemsize for dt in dtypes)
    n_arrays = len(inputs) + 1

    # Lane-dense 2-D view.  Prefer a lane count that leaves >= `sub` rows.
    lanes = None
    for cand in _LANE_CANDIDATES:
        if total % cand == 0 and total // cand >= sub:
            lanes = cand
            break
    if lanes is None:
        for cand in reversed(_LANE_CANDIDATES):
            if total % cand == 0:
                lanes = cand
                break
    if lanes is not None:
        rows = total // lanes
    else:
        # Element count not a multiple of 128: keep the natural (leading,last)
        # view; the full-extent last dim satisfies the lane constraint and no
        # pad/slice HBM round trip is paid.  Lane utilization is whatever the
        # tensor's own last dim provides (rare, awkward-size case).
        lanes = shape[-1] if len(shape) >= 1 else 1
        rows = total // max(1, lanes)

    view = (rows, lanes)
    x2ds = [a.reshape(view) for a in inputs]

    target = _BLOCK_BUDGET_BYTES // n_arrays
    tr = _pick_tile(rows, sub, lanes * itemsize, target)
    tr = _ensure_min_grid(rows, tr, sub, lanes * itemsize)
    grid = (pl.cdiv(rows, tr),)

    in_specs = [pl.BlockSpec((tr, lanes), lambda i: (i, 0)) for _ in x2ds]
    args = list(x2ds)
    if smem_arg is not None:
        in_specs = [pl.BlockSpec(memory_space=pltpu.MemorySpace.SMEM)] + in_specs
        args = [smem_arg] + args

    block_bytes = n_arrays * tr * lanes * itemsize
    out2d = pl.pallas_call(
        kernel,
        out_shape=jax.ShapeDtypeStruct(view, out_dtype),
        grid_spec=pltpu.PrefetchScalarGridSpec(
            num_scalar_prefetch=0,
            grid=grid,
            in_specs=in_specs,
            out_specs=pl.BlockSpec((tr, lanes), lambda i: (i, 0)),
        ),
        compiler_params=pltpu.CompilerParams(
            dimension_semantics=("parallel",),
            vmem_limit_bytes=_vmem_limit_bytes(block_bytes)),
    )(*args)
    return out2d.reshape(shape)


def _softmax(x, dim):
    nd = x.ndim
    d = dim if dim >= 0 else dim + nd
    shape = x.shape
    c = shape[d]
    outer = int(math.prod(shape[:d]))
    inner = int(math.prod(shape[d + 1:]))
    itemsize = jnp.dtype(x.dtype).itemsize
    work_item = max(itemsize, 4)           # in-kernel f32 upcast working set
    sub = _sublane_multiple(x.dtype)

    if inner == 1:
        # Softmax over the (effectively) last axis: reduce along lanes.
        # TODO(synk): for small C (<128) stores are lane-masked at C/128
        # utilization; a lane-dense regrouping (rows -> (rows/G, G*C) with an
        # in-kernel segmented reduce) would help the store-bound case but
        # requires an in-kernel relayout that is not wired up here.
        rows = outer
        x2 = x.reshape(rows, c)
        row_bytes = 2 * c * work_item
        tr = _pick_tile(rows, sub, row_bytes, _BLOCK_BUDGET_BYTES)
        tr = _ensure_min_grid(rows, tr, sub, row_bytes)
        grid = (pl.cdiv(rows, tr),)
        block_bytes = tr * row_bytes
        out = pl.pallas_call(
            _softmax_lastdim_kernel,
            out_shape=jax.ShapeDtypeStruct((rows, c), x.dtype),
            grid_spec=pltpu.PrefetchScalarGridSpec(
                num_scalar_prefetch=0,
                grid=grid,
                in_specs=[pl.BlockSpec((tr, c), lambda i: (i, 0))],
                out_specs=pl.BlockSpec((tr, c), lambda i: (i, 0)),
            ),
            compiler_params=pltpu.CompilerParams(
                dimension_semantics=("parallel",),
                vmem_limit_bytes=_vmem_limit_bytes(block_bytes)),
        )(x2)
        return out.reshape(shape)

    # Softmax over a non-last axis: view as (outer, C, inner) -- no moveaxis /
    # XLA transpose.  The reduced axis C is a full extent on the sublane block
    # axis, so masked tails (outer / inner) never touch the reduction axis:
    # garbage rows/lanes pass through exp() but are dropped on the masked
    # store, which is safe.
    x3 = x.reshape(outer, c, inner)
    if inner <= 128:
        t_inner = inner                    # full extent -> lane constraint ok
    else:
        t_inner = _pick_tile(inner, 128, 2 * c * work_item,
                             _BLOCK_BUDGET_BYTES)
    # Fold multiple `outer` indices per grid step so blocks stay multi-MiB
    # even for CNN shapes (e.g. C=4, H*W=256), instead of KB-scale DMAs.
    per_outer_bytes = 2 * c * t_inner * work_item
    t_outer = _pick_tile(outer, 1, per_outer_bytes, _BLOCK_BUDGET_BYTES)
    if pl.cdiv(inner, t_inner) == 1:
        t_outer = _ensure_min_grid(outer, t_outer, 1, per_outer_bytes)
    grid = (pl.cdiv(outer, t_outer), pl.cdiv(inner, t_inner))
    block_bytes = t_outer * per_outer_bytes
    out = pl.pallas_call(
        _softmax_sublane_kernel,
        out_shape=jax.ShapeDtypeStruct((outer, c, inner), x.dtype),
        grid_spec=pltpu.PrefetchScalarGridSpec(
            num_scalar_prefetch=0,
            grid=grid,
            in_specs=[pl.BlockSpec((t_outer, c, t_inner),
                                   lambda i, j: (i, 0, j))],
            out_specs=pl.BlockSpec((t_outer, c, t_inner),
                                   lambda i, j: (i, 0, j)),
        ),
        compiler_params=pltpu.CompilerParams(
            dimension_semantics=("parallel", "parallel"),
            vmem_limit_bytes=_vmem_limit_bytes(block_bytes)),
    )(x3)
    return out.reshape(shape)


def _glu(x, dim):
    nd = x.ndim
    d = dim if dim >= 0 else dim + nd
    shape = x.shape
    c = shape[d]
    if c % 2 != 0:
        raise ValueError("GLU requires an even size along the split dimension")
    half = c // 2
    outer = int(math.prod(shape[:d]))
    inner = int(math.prod(shape[d + 1:]))
    half_len = half * inner
    out_shape = shape[:d] + (half,) + shape[d + 1:]
    itemsize = jnp.dtype(x.dtype).itemsize
    sub = _sublane_multiple(x.dtype)

    if half_len % 128 == 0:
        # Zero-copy split: x viewed as (outer, 2, half_len) (free contiguous
        # reshape); the two halves are selected purely by the BlockSpec
        # index_map (middle-axis index 0 vs 1), so no pre-sliced HBM copies
        # are materialized -> ~1.5x less HBM traffic than a pre-split.
        x3 = x.reshape(outer, 2, half_len)
        target = _BLOCK_BUDGET_BYTES // 3               # a, b, out blocks
        t_l = _pick_tile(half_len, 128, itemsize, target)
        t_o = _pick_tile(outer, sub, t_l * itemsize, target)
        if pl.cdiv(half_len, t_l) == 1:
            t_o = _ensure_min_grid(outer, t_o, sub, 3 * t_l * itemsize)
        grid = (pl.cdiv(outer, t_o), pl.cdiv(half_len, t_l))
        block_bytes = 3 * t_o * t_l * itemsize
        out2 = pl.pallas_call(
            _glu_kernel,
            out_shape=jax.ShapeDtypeStruct((outer, half_len), x.dtype),
            grid_spec=pltpu.PrefetchScalarGridSpec(
                num_scalar_prefetch=0,
                grid=grid,
                in_specs=[
                    # `None` squeezes the split axis: kernel sees 2-D blocks.
                    pl.BlockSpec((t_o, None, t_l), lambda i, j: (i, 0, j)),
                    pl.BlockSpec((t_o, None, t_l), lambda i, j: (i, 1, j)),
                ],
                out_specs=pl.BlockSpec((t_o, t_l), lambda i, j: (i, j)),
            ),
            compiler_params=pltpu.CompilerParams(
                dimension_semantics=("parallel", "parallel"),
                vmem_limit_bytes=_vmem_limit_bytes(block_bytes)),
        )(x3, x3)
        return out2.reshape(out_shape)

    # TODO(synk): fallback pre-split pays one extra HBM round trip; only taken
    # when half*inner is not a multiple of 128 (tiny contiguous halves, where
    # the lane-dense flat path wins back the store efficiency).
    a = lax.slice_in_dim(x, 0, half, axis=d)
    b = lax.slice_in_dim(x, half, c, axis=d)
    return _run_flat_elementwise(_glu_kernel, [a, b], x.dtype)


def pallas_activation(x, act_type, **kwargs):
    """Forward pass of DuckNet's Activation(act_type, **kwargs) module."""
    act_type = act_type.lower()

    if act_type == "prelu":
        # PyTorch default: num_parameters=1, init=0.25 (scalar learned weight).
        # TODO(synk): per-channel PReLU (num_parameters=C) is not wired up.
        init = kwargs.get("init", 0.25)
        w = jnp.array([init], dtype=jnp.float32)
        return _run_flat_elementwise(_prelu_kernel, [x], x.dtype, smem_arg=w)

    if act_type == "glu":
        return _glu(x, kwargs.get("dim", -1))

    if act_type == "softmax":
        dim = kwargs.get("dim", None)
        if dim is None:
            dim = -1
        return _softmax(x, dim)

    fn = _elementwise_fn(act_type, **kwargs)
    return _run_flat_elementwise(
        functools.partial(_elementwise_kernel, fn), [x], x.dtype)


# ----------------------------------------------------------------------------
# Demo / self-check
# ----------------------------------------------------------------------------
if __name__ == "__main__":
    key = jax.random.PRNGKey(0)
    x = jax.random.normal(key, (2, 4, 16, 16), dtype=jnp.float32)   # NCHW
    x_odd = jax.random.normal(jax.random.PRNGKey(1), (3, 5, 7),
                              dtype=jnp.float32)                    # awkward size

    checks = []

    # 'relu' is what DuckNet actually uses.
    y = jax.block_until_ready(pallas_activation(x, "relu"))
    checks.append((y, jnp.maximum(x, 0.0)))

    # Awkward element count (not a multiple of 128): exercises the no-pad path.
    y = jax.block_until_ready(pallas_activation(x_odd, "relu"))
    checks.append((y, jnp.maximum(x_odd, 0.0)))

    y = jax.block_until_ready(pallas_activation(x, "gelu"))
    checks.append((y, jax.nn.gelu(x, approximate=False)))

    y = jax.block_until_ready(pallas_activation(x, "silu"))
    checks.append((y, x * jax.nn.sigmoid(x)))

    y = jax.block_until_ready(pallas_activation(x, "prelu"))
    checks.append((y, jnp.where(x >= 0, x, 0.25 * x)))

    # GLU over the channel dim: zero-copy BlockSpec split path.
    y = jax.block_until_ready(pallas_activation(x, "glu", dim=1))
    a, b = jnp.split(x, 2, axis=1)
    checks.append((y, a * jax.nn.sigmoid(b)))

    # GLU over the last dim (tiny halves): pre-split fallback path.
    y = jax.block_until_ready(pallas_activation(x, "glu", dim=-1))
    a, b = jnp.split(x, 2, axis=-1)
    checks.append((y, a * jax.nn.sigmoid(b)))

    # Softmax over channels (non-last dim, sublane-reduce path).
    y = jax.block_until_ready(pallas_activation(x, "softmax", dim=1))
    checks.append((y, jax.nn.softmax(x, axis=1)))

    # Softmax over the last dim (lane-reduce path).
    y = jax.block_until_ready(pallas_activation(x, "softmax", dim=-1))
    checks.append((y, jax.nn.softmax(x, axis=-1)))

    for got, ref in checks:
        assert got.shape == ref.shape and got.dtype == ref.dtype
        assert jnp.max(jnp.abs(got - ref)) < 1e-5, "mismatch vs reference"

    print("KERNEL_OK")
</pallas_src>

<mosaic_0001>
module attributes {stable_mosaic.version = 11 : i64} {
  func.func @_elementwise_kernel(%arg0: i32, %arg1: memref<8x256xf32, #tpu.memory_space<vmem>>, %arg2: memref<8x256xf32, #tpu.memory_space<vmem>>) attributes {dimension_semantics = [#tpu.dimension_semantics<parallel>], iteration_bounds = array<i64: 1>, scalar_prefetch = 0 : i64, scratch_operands = 0 : i64, tpu.core_type = #tpu.core_type<tc>, window_params = [{transform_indices = @transform_0, window_bounds = array<i64: 8, 256>}, {transform_indices = @transform_1, window_bounds = array<i64: 8, 256>}]} {
    %c0 = arith.constant 0 : index
    %c0_0 = arith.constant 0 : index
    %0 = vector.load %arg1[%c0, %c0_0] : memref<8x256xf32, #tpu.memory_space<vmem>>, vector<8x256xf32>
    %cst = arith.constant 0.000000e+00 : f32
    %1 = vector.broadcast %cst : f32 to vector<8x256xf32>
    %2 = arith.maximumf %0, %1 : vector<8x256xf32>
    %c0_1 = arith.constant 0 : index
    %c0_2 = arith.constant 0 : index
    %3 = vector.load %arg2[%c0_1, %c0_2] : memref<8x256xf32, #tpu.memory_space<vmem>>, vector<8x256xf32>
    tpu.vector_store %arg2[%c0_1, %c0_2], %2 {strides = array<i32>} : memref<8x256xf32, #tpu.memory_space<vmem>>, vector<8x256xf32>,
    return
  }
  func.func @transform_0(%arg0: i32) -> (i32, i32) {
    %c0_i32 = arith.constant 0 : i32
    %c0_i32_0 = arith.constant 0 : i32
    return %arg0, %c0_i32 : i32, i32
  }
  func.func @transform_1(%arg0: i32) -> (i32, i32) {
    %c0_i32 = arith.constant 0 : i32
    %c0_i32_0 = arith.constant 0 : i32
    return %arg0, %c0_i32 : i32, i32
  }
}

</mosaic_0001>

<bundles_post_ra>
// kernel: tpu_custom_call.1
= control target key start
LH: loop header
LB: loop body
LE: loop exit
PB: predicated region body
PF: predicated region fallthrough
CT: control target
= control target key end

     0   :  { %6 = vsyncpa [#allocation3], 0  ;;  %s118_s0 = inlined_call_operand.hbm [shape: f32[8,256], index: 0, kind: input, shape index: {}]   ;;  %s119_s1 = inlined_call_operand.hbm [shape: f32[8,256], index: 1, kind: output, shape index: {}]  }
   0x1   :  { %7 = vsyncpa [#allocation4], 0  ;;  %s13_s8 = sshll.u32 %s118_s0, 4  ;;  %s100_s9 = smov [#allocation2]   ;;  %s14_s8 = int_to_ptr.hbm [resolvable:$true] %s13_s8 }
   0x2   :  { %s15_s10 = sshll.u32 %s100_s9, 4  ;;  %s16_s10 = int_to_ptr.vmem [resolvable:$true] %s15_s10 }
   0x3   :  { %18 = dma.hbm_to_vmem [thread:$0]  %s14_s8, 256, %s16_s10, [#allocation3]  }
   0x4   :  { %96 = dma.done.wait [#allocation3], 256  }
   0x5   :  { %97 = vsyncadd [#allocation3], 4294967040  ;;  %s101_s11 = smov [#allocation5]   ;;  %s36_s15 = sshll.u32 %s119_s1, 4  ;;  %v23_v0 = vld [vmem:[#allocation2] sm:$0xff]  ;;  %v24_v1 = vld [vmem:[#allocation2 + $0x8] sm:$0xff]  ;;  %s37_s15 = int_to_ptr.hbm [resolvable:$true] %s36_s15 }
   0x6   :  { %s34_s12 = sshll.u32 %s101_s11, 4  ;;  %v25_v2 = vmax.f32 %v23_v0, 0.0  ;;  %v26_v3 = vmax.f32 %v24_v1, 0.0  ;;  %s35_s12 = int_to_ptr.vmem [resolvable:$true] %s34_s12 }
   0x8   :  { %27 = vst [vmem:[#allocation5] sm:$0xff] %v25_v2 }
   0x9   :  { %28 = vst [vmem:[#allocation5 + $0x8] sm:$0xff] %v26_v3 }
   0xa   :  { %39 = dma.vmem_to_hbm [thread:$0]  %s35_s12, 256, %s37_s15, [#allocation4]  }
   0xb   :  { %98 = dma.done.wait [#allocation4], 256  }
   0xc   :  { %99 = vsyncadd [#allocation4], 4294967040 }
   0xd   :  { %44 = vsyncpa [#allocation3], 1 }
   0xe   :  { %45 = vsyncpa [#allocation4], 1 }

</bundles_post_ra>
